<compile_context>
chip_gen: v5e
topology: v5e:2x2
jax: 0.10.0
libtpu: 0.0.40
codegen_flags: <defaults>
</compile_context>

<pallas_src>
import jax
import jax.numpy as jnp
from jax.experimental import pallas as pl
from jax.experimental.pallas import tpu as pltpu

_LANE = 128     # lane width: last-dim alignment for lane-dense stores
_ROW = 16       # batch-tile row alignment (bf16 sublane pack; also fine for f32)
_K_ALIGN = 16   # first-layer contraction-dim alignment (bf16 sublane pack)


def _round_up(n, m):
    return (n + m - 1) // m * m


def _fc_relu_kernel(x_ref, w1_ref, b1_ref, w2_ref, b2_ref, w3_ref, b3_ref, o_ref):
    # Three MXU matmuls with bf16 operands and f32 accumulation; bias + ReLU
    # stay in f32.  Padded lanes are exactly 0 through every layer (padded
    # weight rows/cols and biases are 0, relu(0) = 0).
    h = jnp.dot(x_ref[...].astype(jnp.bfloat16), w1_ref[...],
                preferred_element_type=jnp.float32)
    h = jnp.maximum(h + b1_ref[...], 0.0)
    h = jnp.dot(h.astype(jnp.bfloat16), w2_ref[...],
                preferred_element_type=jnp.float32)
    h = jnp.maximum(h + b2_ref[...], 0.0)
    h = jnp.dot(h.astype(jnp.bfloat16), w3_ref[...],
                preferred_element_type=jnp.float32)
    h = jnp.maximum(h + b3_ref[...], 0.0)
    o_ref[...] = h.astype(o_ref.dtype)
    # TODO(synk): for very wide padded layers (>~2K), loop over 256/512-wide
    # N-slices of W1/W2 (lax.fori_loop, unroll=True) to bound the live h.


def prepare_params(params):
    """One-time, outside the hot path: transpose PyTorch-layout (out,in)
    weights to (in,out), cast to bf16 and zero-pad.  Output (lane) dims are
    padded to 128 so every matmul-N / store is lane-dense; the first-layer K
    dim is only padded to the bf16 sublane multiple (16).  Biases stay f32,
    shaped (1, out_pad)."""
    prepped = {}
    prev_out_pad = None
    for name in ("fc1", "fc2", "fc3"):
        W, b = params[name]
        fout, fin = W.shape
        fin_p = _round_up(fin, _K_ALIGN) if prev_out_pad is None else prev_out_pad
        fout_p = _round_up(fout, _LANE)
        Wt = (jnp.zeros((fin_p, fout_p), jnp.bfloat16)
              .at[:fin, :fout].set(W.T.astype(jnp.bfloat16)))
        bp = jnp.zeros((1, fout_p), jnp.float32).at[0, :fout].set(b.astype(jnp.float32))
        prepped[name] = (Wt, bp)
        prev_out_pad = fout_p
    return prepped


def _vmem_capacity_bytes():
    try:
        info = pltpu.get_tpu_info()
        cap = int(getattr(info, "vmem_capacity_bytes", 0))
        if cap > 0:
            return cap
    except Exception:
        pass
    return 64 << 20  # conservative default = v7x per-TC capacity


def fc_relu(x, prepped, out_features, *, tm=None):
    """x: (B, in_features). prepped: output of prepare_params().
    Returns (B, out_features) float32."""
    (w1, b1), (w2, b2), (w3, b3) = prepped["fc1"], prepped["fc2"], prepped["fc3"]
    B, fin = x.shape
    fin_p = w1.shape[0]
    h1_p, h2_p, out_p = w1.shape[1], w2.shape[1], w3.shape[1]

    vmem_cap = _vmem_capacity_bytes()
    vmem_budget = int(vmem_cap * 0.85)

    # Default batch tile: larger on 128 MiB parts (v5e/v6e), tighter on v7x.
    if tm is None:
        tm = 1024 if vmem_cap >= (96 << 20) else 512

    # Cap the tile so the "parallel" batch axis has >=2 grid steps whenever
    # the batch is splittable (lets v7x shard the grid across both TCs).
    b_aligned = _round_up(B, _ROW)
    tm_cap = b_aligned
    if b_aligned >= 2 * _ROW:
        tm_cap = _round_up(-(-b_aligned // 2), _ROW)
    tm_eff = max(_ROW, min(_round_up(tm, _ROW), tm_cap))

    # Fit check: resident weights (x2 conservatively in case the single-buffer
    # request is rejected) + double-buffered x/out tiles + live f32 h and its
    # bf16 copy.  Shrink tm until it fits the per-core budget.
    wbytes = sum(a.size * a.dtype.itemsize for a in (w1, b1, w2, b2, w3, b3))
    max_w = max(fin_p, h1_p, h2_p, out_p)

    def tile_bytes(t):
        return 2 * t * fin_p * 4 + 2 * t * out_p * 4 + t * max_w * (4 + 2)

    while tm_eff > _ROW and 2 * wbytes + tile_bytes(tm_eff) > vmem_budget:
        tm_eff = max(_ROW, _round_up(tm_eff // 2, _ROW))

    b_pad = _round_up(B, tm_eff)
    grid_m = b_pad // tm_eff

    # Pad/cast x only when actually needed (fuses the bf16 cast into the same
    # op); padded rows/lanes are inert because the matching weight rows are 0.
    need_x_pad = (fin != fin_p) or (b_pad != B)
    if need_x_pad:
        x_in = (jnp.zeros((b_pad, fin_p), jnp.bfloat16)
                .at[:B, :fin].set(x.astype(jnp.bfloat16)))
    else:
        x_in = x
    x_cols = x_in.shape[1]

    needed = 2 * wbytes + tile_bytes(tm_eff)
    vmem_limit = int(min(max(2 * needed, 32 << 20), vmem_budget))

    flops = 2 * B * (fin_p * h1_p + h1_p * h2_p + h2_p * out_p)
    bytes_accessed = x_in.size * x_in.dtype.itemsize + wbytes + b_pad * out_p * 4
    cost = pl.CostEstimate(flops=flops, transcendentals=0,
                           bytes_accessed=bytes_accessed)

    def build(single_buffer_weights):
        def resident(a):
            if single_buffer_weights:
                # Constant index map => never a new block to prefetch; keep a
                # single VMEM copy instead of the default double buffer.
                return pl.BlockSpec(a.shape, lambda i: (0,) * a.ndim,
                                    pipeline_mode=pl.Buffered(1))
            return pl.BlockSpec(a.shape, lambda i: (0,) * a.ndim)

        return pl.pallas_call(
            _fc_relu_kernel,
            out_shape=jax.ShapeDtypeStruct((b_pad, out_p), jnp.float32),
            grid=(grid_m,),
            in_specs=[
                pl.BlockSpec((tm_eff, x_cols), lambda i: (i, 0)),  # streamed x tile
                resident(w1), resident(b1),
                resident(w2), resident(b2),
                resident(w3), resident(b3),
            ],
            out_specs=pl.BlockSpec((tm_eff, out_p), lambda i: (i, 0)),
            compiler_params=pltpu.CompilerParams(
                dimension_semantics=("parallel",),
                vmem_limit_bytes=vmem_limit,
            ),
            cost_estimate=cost,
        )

    args = (x_in, w1, b1, w2, b2, w3, b3)
    try:
        out = build(True)(*args)
    except Exception:
        # Older/stricter builds may reject Buffered(1); default double
        # buffering is correct, just uses 2x the (small) resident-weight VMEM.
        out = build(False)(*args)

    if (b_pad != B) or (out_p != out_features):
        out = out[:B, :out_features]
    return out


def init_params(key, in_features=4, out_features=4):
    """Deterministic init mimicking nn.Linear's scale.  PyTorch layout:
    W (out, in), b (out,)."""
    dims = [(in_features, in_features),    # fc1
            (out_features, in_features),   # fc2
            (out_features, out_features)]  # fc3
    params = {}
    for name, (fout, fin) in zip(("fc1", "fc2", "fc3"), dims):
        key, kw, kb = jax.random.split(key, 3)
        bound = 1.0 / (fin ** 0.5)
        W = jax.random.uniform(kw, (fout, fin), jnp.float32, -bound, bound)
        b = jax.random.uniform(kb, (fout,), jnp.float32, -bound, bound)
        params[name] = (W, b)
    return params


def fc_relu_reference(x, params):
    h = x
    for name in ("fc1", "fc2", "fc3"):
        W, b = params[name]
        h = jnp.maximum(h @ W.T + b, 0.0)
    return h


if __name__ == "__main__":
    key = jax.random.PRNGKey(0)
    k_param, k_x = jax.random.split(key)

    in_features, out_features, batch = 4, 4, 8
    params = init_params(k_param, in_features, out_features)
    x = jax.random.normal(k_x, (batch, in_features), jnp.float32)

    prepped = prepare_params(params)   # one-time pad/transpose/bf16 cast
    out = fc_relu(x, prepped, out_features)
    out = jax.block_until_ready(out)

    ref = fc_relu_reference(x, params)
    assert out.shape == (batch, out_features)
    # bf16 MXU inputs with f32 accumulation: agreement vs f32 reference at
    # ~1e-2 relative, per the review's tolerance note.
    assert jnp.allclose(out, ref, atol=3e-2, rtol=3e-2), "mismatch vs reference"

    print("KERNEL_OK")
</pallas_src>

<mosaic_0001>
module attributes {stable_mosaic.version = 11 : i64} {
  func.func @_fc_relu_kernel(%arg0: i32, %arg1: memref<16x16xbf16, #tpu.memory_space<vmem>>, %arg2: memref<16x128xbf16, #tpu.memory_space<vmem>>, %arg3: memref<1x128xf32, #tpu.memory_space<vmem>>, %arg4: memref<128x128xbf16, #tpu.memory_space<vmem>>, %arg5: memref<1x128xf32, #tpu.memory_space<vmem>>, %arg6: memref<128x128xbf16, #tpu.memory_space<vmem>>, %arg7: memref<1x128xf32, #tpu.memory_space<vmem>>, %arg8: memref<16x128xf32, #tpu.memory_space<vmem>>) attributes {dimension_semantics = [#tpu.dimension_semantics<parallel>], iteration_bounds = array<i64: 1>, scalar_prefetch = 0 : i64, scratch_operands = 0 : i64, tpu.core_type = #tpu.core_type<tc>, window_params = [{transform_indices = @transform_0, window_bounds = array<i64: 16, 16>}, {pipeline_mode = #tpu.pipeline_mode<synchronous>, transform_indices = @transform_1, window_bounds = array<i64: 16, 128>}, {pipeline_mode = #tpu.pipeline_mode<synchronous>, transform_indices = @transform_2, window_bounds = array<i64: 1, 128>}, {pipeline_mode = #tpu.pipeline_mode<synchronous>, transform_indices = @transform_3, window_bounds = array<i64: 128, 128>}, {pipeline_mode = #tpu.pipeline_mode<synchronous>, transform_indices = @transform_4, window_bounds = array<i64: 1, 128>}, {pipeline_mode = #tpu.pipeline_mode<synchronous>, transform_indices = @transform_5, window_bounds = array<i64: 128, 128>}, {pipeline_mode = #tpu.pipeline_mode<synchronous>, transform_indices = @transform_6, window_bounds = array<i64: 1, 128>}, {transform_indices = @transform_7, window_bounds = array<i64: 16, 128>}]} {
    %c0 = arith.constant 0 : index
    %c0_0 = arith.constant 0 : index
    %0 = vector.load %arg1[%c0, %c0_0] : memref<16x16xbf16, #tpu.memory_space<vmem>>, vector<16x16xbf16>
    %c0_1 = arith.constant 0 : index
    %c0_2 = arith.constant 0 : index
    %1 = vector.load %arg2[%c0_1, %c0_2] : memref<16x128xbf16, #tpu.memory_space<vmem>>, vector<16x128xbf16>
    %cst = arith.constant dense<0.000000e+00> : vector<16x128xf32>
    %2 = tpu.matmul %0, %1, %cst {dimension_numbers = #tpu.dot_dimension_numbers<[1], [0], [0], [1], [0, 0, 1, 1], [], []>} : vector<16x16xbf16>, vector<16x128xbf16>, vector<16x128xf32> -> vector<16x128xf32>
    %c0_3 = arith.constant 0 : index
    %c0_4 = arith.constant 0 : index
    %3 = vector.load %arg3[%c0_3, %c0_4] : memref<1x128xf32, #tpu.memory_space<vmem>>, vector<1x128xf32>
    %4 = vector.broadcast %3 : vector<1x128xf32> to vector<16x128xf32>
    %5 = arith.addf %2, %4 : vector<16x128xf32>
    %cst_5 = arith.constant 0.000000e+00 : f32
    %6 = vector.broadcast %cst_5 : f32 to vector<16x128xf32>
    %7 = arith.maximumf %5, %6 : vector<16x128xf32>
    %8 = arith.truncf %7 : vector<16x128xf32> to vector<16x128xbf16>
    %c0_6 = arith.constant 0 : index
    %c0_7 = arith.constant 0 : index
    %9 = vector.load %arg4[%c0_6, %c0_7] : memref<128x128xbf16, #tpu.memory_space<vmem>>, vector<128x128xbf16>
    %cst_8 = arith.constant dense<0.000000e+00> : vector<16x128xf32>
    %10 = tpu.matmul %8, %9, %cst_8 {dimension_numbers = #tpu.dot_dimension_numbers<[1], [0], [0], [1], [0, 0, 1, 1], [], []>} : vector<16x128xbf16>, vector<128x128xbf16>, vector<16x128xf32> -> vector<16x128xf32>
    %c0_9 = arith.constant 0 : index
    %c0_10 = arith.constant 0 : index
    %11 = vector.load %arg5[%c0_9, %c0_10] : memref<1x128xf32, #tpu.memory_space<vmem>>, vector<1x128xf32>
    %12 = vector.broadcast %11 : vector<1x128xf32> to vector<16x128xf32>
    %13 = arith.addf %10, %12 : vector<16x128xf32>
    %cst_11 = arith.constant 0.000000e+00 : f32
    %14 = vector.broadcast %cst_11 : f32 to vector<16x128xf32>
    %15 = arith.maximumf %13, %14 : vector<16x128xf32>
    %16 = arith.truncf %15 : vector<16x128xf32> to vector<16x128xbf16>
    %c0_12 = arith.constant 0 : index
    %c0_13 = arith.constant 0 : index
    %17 = vector.load %arg6[%c0_12, %c0_13] : memref<128x128xbf16, #tpu.memory_space<vmem>>, vector<128x128xbf16>
    %cst_14 = arith.constant dense<0.000000e+00> : vector<16x128xf32>
    %18 = tpu.matmul %16, %17, %cst_14 {dimension_numbers = #tpu.dot_dimension_numbers<[1], [0], [0], [1], [0, 0, 1, 1], [], []>} : vector<16x128xbf16>, vector<128x128xbf16>, vector<16x128xf32> -> vector<16x128xf32>
    %c0_15 = arith.constant 0 : index
    %c0_16 = arith.constant 0 : index
    %19 = vector.load %arg7[%c0_15, %c0_16] : memref<1x128xf32, #tpu.memory_space<vmem>>, vector<1x128xf32>
    %20 = vector.broadcast %19 : vector<1x128xf32> to vector<16x128xf32>
    %21 = arith.addf %18, %20 : vector<16x128xf32>
    %cst_17 = arith.constant 0.000000e+00 : f32
    %22 = vector.broadcast %cst_17 : f32 to vector<16x128xf32>
    %23 = arith.maximumf %21, %22 : vector<16x128xf32>
    %c0_18 = arith.constant 0 : index
    %c0_19 = arith.constant 0 : index
    %24 = vector.load %arg8[%c0_18, %c0_19] : memref<16x128xf32, #tpu.memory_space<vmem>>, vector<16x128xf32>
    tpu.vector_store %arg8[%c0_18, %c0_19], %23 {strides = array<i32>} : memref<16x128xf32, #tpu.memory_space<vmem>>, vector<16x128xf32>,
    return
  }
  func.func @transform_0(%arg0: i32) -> (i32, i32) {
    %c0_i32 = arith.constant 0 : i32
    %c0_i32_0 = arith.constant 0 : i32
    return %arg0, %c0_i32 : i32, i32
  }
  func.func @transform_1(%arg0: i32) -> (i32, i32) {
    %c0_i32 = arith.constant 0 : i32
    %c0_i32_0 = arith.constant 0 : i32
    %c0_i32_1 = arith.constant 0 : i32
    return %c0_i32, %c0_i32_0 : i32, i32
  }
  func.func @transform_2(%arg0: i32) -> (i32, i32) {
    %c0_i32 = arith.constant 0 : i32
    %c0_i32_0 = arith.constant 0 : i32
    %c0_i32_1 = arith.constant 0 : i32
    return %c0_i32, %c0_i32_0 : i32, i32
  }
  func.func @transform_3(%arg0: i32) -> (i32, i32) {
    %c0_i32 = arith.constant 0 : i32
    %c0_i32_0 = arith.constant 0 : i32
    %c0_i32_1 = arith.constant 0 : i32
    return %c0_i32, %c0_i32_0 : i32, i32
  }
  func.func @transform_4(%arg0: i32) -> (i32, i32) {
    %c0_i32 = arith.constant 0 : i32
    %c0_i32_0 = arith.constant 0 : i32
    %c0_i32_1 = arith.constant 0 : i32
    return %c0_i32, %c0_i32_0 : i32, i32
  }
  func.func @transform_5(%arg0: i32) -> (i32, i32) {
    %c0_i32 = arith.constant 0 : i32
    %c0_i32_0 = arith.constant 0 : i32
    %c0_i32_1 = arith.constant 0 : i32
    return %c0_i32, %c0_i32_0 : i32, i32
  }
  func.func @transform_6(%arg0: i32) -> (i32, i32) {
    %c0_i32 = arith.constant 0 : i32
    %c0_i32_0 = arith.constant 0 : i32
    %c0_i32_1 = arith.constant 0 : i32
    return %c0_i32, %c0_i32_0 : i32, i32
  }
  func.func @transform_7(%arg0: i32) -> (i32, i32) {
    %c0_i32 = arith.constant 0 : i32
    %c0_i32_0 = arith.constant 0 : i32
    return %arg0, %c0_i32 : i32, i32
  }
}

module attributes {stable_mosaic.version = 11 : i64} {
  func.func @_fc_relu_kernel(%arg0: i32, %arg1: memref<16x16xbf16, #tpu.memory_space<vmem>>, %arg2: memref<16x128xbf16, #tpu.memory_space<vmem>>, %arg3: memref<1x128xf32, #tpu.memory_space<vmem>>, %arg4: memref<128x128xbf16, #tpu.memory_space<vmem>>, %arg5: memref<1x128xf32, #tpu.memory_space<vmem>>, %arg6: memref<128x128xbf16, #tpu.memory_space<vmem>>, %arg7: memref<1x128xf32, #tpu.memory_space<vmem>>, %arg8: memref<16x128xf32, #tpu.memory_space<vmem>>) attributes {dimension_semantics = [#tpu.dimension_semantics<parallel>], iteration_bounds = array<i64: 1>, scalar_prefetch = 0 : i64, scratch_operands = 0 : i64, tpu.core_type = #tpu.core_type<tc>, window_params = [{transform_indices = @transform_0, window_bounds = array<i64: 16, 16>}, {pipeline_mode = #tpu.pipeline_mode<synchronous>, transform_indices = @transform_1, window_bounds = array<i64: 16, 128>}, {pipeline_mode = #tpu.pipeline_mode<synchronous>, transform_indices = @transform_2, window_bounds = array<i64: 1, 128>}, {pipeline_mode = #tpu.pipeline_mode<synchronous>, transform_indices = @transform_3, window_bounds = array<i64: 128, 128>}, {pipeline_mode = #tpu.pipeline_mode<synchronous>, transform_indices = @transform_4, window_bounds = array<i64: 1, 128>}, {pipeline_mode = #tpu.pipeline_mode<synchronous>, transform_indices = @transform_5, window_bounds = array<i64: 128, 128>}, {pipeline_mode = #tpu.pipeline_mode<synchronous>, transform_indices = @transform_6, window_bounds = array<i64: 1, 128>}, {transform_indices = @transform_7, window_bounds = array<i64: 16, 128>}]} {
    %c0 = arith.constant 0 : index
    %c0_0 = arith.constant 0 : index
    %0 = vector.load %arg1[%c0, %c0_0] : memref<16x16xbf16, #tpu.memory_space<vmem>>, vector<16x16xbf16>
    %c0_1 = arith.constant 0 : index
    %c0_2 = arith.constant 0 : index
    %1 = vector.load %arg2[%c0_1, %c0_2] : memref<16x128xbf16, #tpu.memory_space<vmem>>, vector<16x128xbf16>
    %cst = arith.constant dense<0.000000e+00> : vector<16x128xf32>
    %2 = tpu.matmul %0, %1, %cst {dimension_numbers = #tpu.dot_dimension_numbers<[1], [0], [0], [1], [0, 0, 1, 1], [], []>} : vector<16x16xbf16>, vector<16x128xbf16>, vector<16x128xf32> -> vector<16x128xf32>
    %c0_3 = arith.constant 0 : index
    %c0_4 = arith.constant 0 : index
    %3 = vector.load %arg3[%c0_3, %c0_4] : memref<1x128xf32, #tpu.memory_space<vmem>>, vector<1x128xf32>
    %4 = vector.broadcast %3 : vector<1x128xf32> to vector<16x128xf32>
    %5 = arith.addf %2, %4 : vector<16x128xf32>
    %cst_5 = arith.constant 0.000000e+00 : f32
    %6 = vector.broadcast %cst_5 : f32 to vector<16x128xf32>
    %7 = arith.maximumf %5, %6 : vector<16x128xf32>
    %8 = arith.truncf %7 : vector<16x128xf32> to vector<16x128xbf16>
    %c0_6 = arith.constant 0 : index
    %c0_7 = arith.constant 0 : index
    %9 = vector.load %arg4[%c0_6, %c0_7] : memref<128x128xbf16, #tpu.memory_space<vmem>>, vector<128x128xbf16>
    %cst_8 = arith.constant dense<0.000000e+00> : vector<16x128xf32>
    %10 = tpu.matmul %8, %9, %cst_8 {dimension_numbers = #tpu.dot_dimension_numbers<[1], [0], [0], [1], [0, 0, 1, 1], [], []>} : vector<16x128xbf16>, vector<128x128xbf16>, vector<16x128xf32> -> vector<16x128xf32>
    %c0_9 = arith.constant 0 : index
    %c0_10 = arith.constant 0 : index
    %11 = vector.load %arg5[%c0_9, %c0_10] : memref<1x128xf32, #tpu.memory_space<vmem>>, vector<1x128xf32>
    %12 = vector.broadcast %11 : vector<1x128xf32> to vector<16x128xf32>
    %13 = arith.addf %10, %12 : vector<16x128xf32>
    %cst_11 = arith.constant 0.000000e+00 : f32
    %14 = vector.broadcast %cst_11 : f32 to vector<16x128xf32>
    %15 = arith.maximumf %13, %14 : vector<16x128xf32>
    %16 = arith.truncf %15 : vector<16x128xf32> to vector<16x128xbf16>
    %c0_12 = arith.constant 0 : index
    %c0_13 = arith.constant 0 : index
    %17 = vector.load %arg6[%c0_12, %c0_13] : memref<128x128xbf16, #tpu.memory_space<vmem>>, vector<128x128xbf16>
    %cst_14 = arith.constant dense<0.000000e+00> : vector<16x128xf32>
    %18 = tpu.matmul %16, %17, %cst_14 {dimension_numbers = #tpu.dot_dimension_numbers<[1], [0], [0], [1], [0, 0, 1, 1], [], []>} : vector<16x128xbf16>, vector<128x128xbf16>, vector<16x128xf32> -> vector<16x128xf32>
    %c0_15 = arith.constant 0 : index
    %c0_16 = arith.constant 0 : index
    %19 = vector.load %arg7[%c0_15, %c0_16] : memref<1x128xf32, #tpu.memory_space<vmem>>, vector<1x128xf32>
    %20 = vector.broadcast %19 : vector<1x128xf32> to vector<16x128xf32>
    %21 = arith.addf %18, %20 : vector<16x128xf32>
    %cst_17 = arith.constant 0.000000e+00 : f32
    %22 = vector.broadcast %cst_17 : f32 to vector<16x128xf32>
    %23 = arith.maximumf %21, %22 : vector<16x128xf32>
    %c0_18 = arith.constant 0 : index
    %c0_19 = arith.constant 0 : index
    %24 = vector.load %arg8[%c0_18, %c0_19] : memref<16x128xf32, #tpu.memory_space<vmem>>, vector<16x128xf32>
    tpu.vector_store %arg8[%c0_18, %c0_19], %23 {strides = array<i32>} : memref<16x128xf32, #tpu.memory_space<vmem>>, vector<16x128xf32>,
    return
  }
  func.func @transform_0(%arg0: i32) -> (i32, i32) {
    %c0_i32 = arith.constant 0 : i32
    %c0_i32_0 = arith.constant 0 : i32
    return %arg0, %c0_i32 : i32, i32
  }
  func.func @transform_1(%arg0: i32) -> (i32, i32) {
    %c0_i32 = arith.constant 0 : i32
    %c0_i32_0 = arith.constant 0 : i32
    %c0_i32_1 = arith.constant 0 : i32
    return %c0_i32, %c0_i32_0 : i32, i32
  }
  func.func @transform_2(%arg0: i32) -> (i32, i32) {
    %c0_i32 = arith.constant 0 : i32
    %c0_i32_0 = arith.constant 0 : i32
    %c0_i32_1 = arith.constant 0 : i32
    return %c0_i32, %c0_i32_0 : i32, i32
  }
  func.func @transform_3(%arg0: i32) -> (i32, i32) {
    %c0_i32 = arith.constant 0 : i32
    %c0_i32_0 = arith.constant 0 : i32
    %c0_i32_1 = arith.constant 0 : i32
    return %c0_i32, %c0_i32_0 : i32, i32
  }
  func.func @transform_4(%arg0: i32) -> (i32, i32) {
    %c0_i32 = arith.constant 0 : i32
    %c0_i32_0 = arith.constant 0 : i32
    %c0_i32_1 = arith.constant 0 : i32
    return %c0_i32, %c0_i32_0 : i32, i32
  }
  func.func @transform_5(%arg0: i32) -> (i32, i32) {
    %c0_i32 = arith.constant 0 : i32
    %c0_i32_0 = arith.constant 0 : i32
    %c0_i32_1 = arith.constant 0 : i32
    return %c0_i32, %c0_i32_0 : i32, i32
  }
  func.func @transform_6(%arg0: i32) -> (i32, i32) {
    %c0_i32 = arith.constant 0 : i32
    %c0_i32_0 = arith.constant 0 : i32
    %c0_i32_1 = arith.constant 0 : i32
    return %c0_i32, %c0_i32_0 : i32, i32
  }
  func.func @transform_7(%arg0: i32) -> (i32, i32) {
    %c0_i32 = arith.constant 0 : i32
    %c0_i32_0 = arith.constant 0 : i32
    return %arg0, %c0_i32 : i32, i32
  }
}

</mosaic_0001>

<bundles_post_ra>
// kernel: tpu_custom_call.1
= control target key start
LH: loop header
LB: loop body
LE: loop exit
PB: predicated region body
PF: predicated region fallthrough
CT: control target
= control target key end

     0   :  { %12 = vsyncpa [#allocation3], 0  ;;  %s627_s0 = inlined_call_operand.hbm [shape: bf16[16,16], index: 0, kind: input, shape index: {}]   ;;  %s628_s1 = inlined_call_operand.hbm [shape: bf16[16,128], index: 1, kind: input, shape index: {}]   ;;  %s629_s2 = inlined_call_operand.vmem [shape: f32[1,128], index: 2, kind: input, shape index: {}]   ;;  %s630_s3 = inlined_call_operand.hbm [shape: bf16[128,128], index: 3, kind: input, shape index: {}]   ;;  %s631_s4 = inlined_call_operand.vmem [shape: f32[1,128], index: 4, kind: input, shape index: {}]   ;;  %s632_s5 = inlined_call_operand.hbm [shape: bf16[128,128], index: 5, kind: input, shape index: {}]   ;;  %s633_s6 = inlined_call_operand.vmem [shape: f32[1,128], index: 6, kind: input, shape index: {}]   ;;  %s634_s7 = inlined_call_operand.hbm [shape: f32[16,128], index: 7, kind: output, shape index: {}]  }
   0x1   :  { %13 = vsyncpa [#allocation6], 0 }
   0x2   :  { %14 = vsyncpa [#allocation9], 0 }
   0x3   :  { %15 = vsyncpa [#allocation4], 0  ;;  %s33_s26 = sshll.u32 %s628_s1, 4  ;;  %s554_s27 = smov [#allocation5]   ;;  %s34_s26 = int_to_ptr.hbm [resolvable:$true] %s33_s26 }
   0x4   :  { %s35_s28 = sshll.u32 %s554_s27, 4  ;;  %s20_s8 = sshll.u32 %s627_s0, 4  ;;  %s36_s28 = int_to_ptr.vmem [resolvable:$true] %s35_s28  ;;  %s21_s8 = int_to_ptr.hbm [resolvable:$true] %s20_s8 }
   0x5   :  { %s555_s9 = smov 64   ;;  %s556_s10 = smov 4  }
   0x6   :  { %41 = dma.hbm_to_vmem [thread:$0]  %s34_s26, 128, %s36_s28, [#allocation6], %s555_s9, %s555_s9, %s556_s10  }
   0x7   :  { %s557_s11 = smov [#allocation2]   ;;  %s48_s15 = sshll.u32 %s630_s3, 4  ;;  %s49_s15 = int_to_ptr.hbm [resolvable:$true] %s48_s15 }
   0x8   :  { %s22_s12 = sshll.u32 %s557_s11, 4  ;;  %s63_s17 = sshll.u32 %s632_s5, 4  ;;  %s23_s12 = int_to_ptr.vmem [resolvable:$true] %s22_s12  ;;  %s64_s17 = int_to_ptr.hbm [resolvable:$true] %s63_s17 }
   0x9   :  { %28 = dma.hbm_to_vmem [thread:$0]  %s21_s8, 128, %s23_s12, [#allocation3], %s555_s9, %s555_s9, %s556_s10  }
   0xa   :  { %s558_s18 = smov [#allocation7]   ;;  %s559_s0 = smov [#allocation8]  }
   0xb   :  { %s50_s19 = sshll.u32 %s558_s18, 4  ;;  %s65_s20 = sshll.u32 %s559_s0, 4  ;;  %s51_s19 = int_to_ptr.vmem [resolvable:$true] %s50_s19  ;;  %s66_s20 = int_to_ptr.vmem [resolvable:$true] %s65_s20 }
   0xc   :  { %56 = dma.hbm_to_vmem [thread:$0]  %s49_s15, 1024, %s51_s19, [#allocation6], %s555_s9, %s555_s9, %s556_s10  }
   0xd   :  { %71 = dma.hbm_to_vmem [thread:$0]  %s64_s17, 1024, %s66_s20, [#allocation9], %s555_s9, %s555_s9, %s556_s10  }
   0xe   :  { %546 = dma.done.wait [#allocation3], 128  }
   0xf   :  { %547 = vsyncadd [#allocation3], 4294967168 }
  0x10   :  { %548 = dma.done.wait [#allocation6], 1152  }
  0x11   :  { %549 = vsyncadd [#allocation6], 4294966144 }
  0x12   :  { %550 = dma.done.wait [#allocation9], 1024  }
  0x13   :  { %551 = vsyncadd [#allocation9], 4294966272  ;;  %v397_v0 = vld [vmem:[#allocation5] sm:$0xff]  ;;  %v396_v2 = vld [vmem:[#allocation2] sm:$0xff]  ;;  %vm110_vm0 = vcmask 130048   ;;  %s560_s24 = smov [#allocation10]  }
  0x14   :  { %v405_v1 = vld [vmem:[#allocation7 + $0x38] sm:$0xff]  ;;  %121 = vmatpush.bf16.msra.mxu0 %v397_v0  ;;  %v404_v3 = vld [vmem:[#allocation7 + $0x30] sm:$0xff]  ;;  %v403_v4 = vld [vmem:[#allocation7 + $0x28] sm:$0xff]  ;;  %s306_s25 = sshll.u32 %s560_s24, 4  ;;  %s561_s28 = smov 128   ;;  %s307_s25 = int_to_ptr.vmem [resolvable:$true] %s306_s25 }
  0x15   :  { %199 = vmatpush.bf16.msra.mxu1 %v405_v1  ;;  %v402_v5 = vld [vmem:[#allocation7 + $0x20] sm:$0xff]  ;;  %v401_v6 = vld [vmem:[#allocation7 + $0x18] sm:$0xff]  ;;  %v400_v7 = vld [vmem:[#allocation7 + $0x10] sm:$0xff]  ;;  %s562_s29 = smov 8  }
  0x16   :  { %v399_v8 = vld [vmem:[#allocation7 + $0x8] sm:$0xff]  ;;  %v398_v9 = vld [vmem:[#allocation7] sm:$0xff]  ;;  %v413_v10 = vld [vmem:[#allocation8 + $0x38] sm:$0xff] }
  0x17   :  { %331 = vmatmul.msk.bf16.vlgmr.msra.gmra.mxu0 %vm110_vm0, %v396_v2  ;;  %284 = vmatpush.bf16.msra.mxu2 %v413_v10  ;;  %v412_v11 = vld [vmem:[#allocation8 + $0x30] sm:$0xff]  ;;  %v411_v12 = vld [vmem:[#allocation8 + $0x28] sm:$0xff]  ;;  %v410_v13 = vld [vmem:[#allocation8 + $0x20] sm:$0xff] }
  0x18   :  { %v423_v15 = vld [vmem:[%s629_s2] ss:$0 sm:$0xff]  ;;  %v409_v22 = vld [vmem:[#allocation8 + $0x18] sm:$0xff]  ;;  %v407_v24 = vld [vmem:[#allocation8 + $0x8] sm:$0xff] }
  0x19   :  { %200 = vmatpush.bf16.msra.mxu1 %v404_v3  ;;  %v408_v23 = vld [vmem:[#allocation8 + $0x10] sm:$0xff]  ;;  %v406_v25 = vld [vmem:[#allocation8] sm:$0xff] }
  0x1a   :  { %v424_v27 = vld [vmem:[%s631_s4] ss:$0 sm:$0xff]  ;;  %s308_s4 = sshll.u32 %s634_s7, 4  ;;  %s309_s4 = int_to_ptr.hbm [resolvable:$true] %s308_s4 }
  0x1b   :  { %285 = vmatpush.bf16.msra.mxu2 %v412_v11  ;;  %v425_v34 = vld [vmem:[%s633_s6] ss:$0 sm:$0xff] }
  0x1d   :  { %201 = vmatpush.bf16.msra.mxu1 %v403_v4 }
  0x1f   :  { %286 = vmatpush.bf16.msra.mxu2 %v411_v12 }
  0x21   :  { %202 = vmatpush.bf16.msra.mxu1 %v402_v5 }
  0x23   :  { %287 = vmatpush.bf16.msra.mxu2 %v410_v13 }
  0x25   :  { %203 = vmatpush.bf16.msra.mxu1 %v401_v6 }
  0x27   :  { %288 = vmatpush.bf16.msra.mxu2 %v409_v22 }
  0x29   :  { %204 = vmatpush.bf16.msra.mxu1 %v400_v7 }
  0x2b   :  { %289 = vmatpush.bf16.msra.mxu2 %v408_v23 }
  0x2d   :  { %205 = vmatpush.bf16.msra.mxu1 %v399_v8 }
  0x2f   :  { %290 = vmatpush.bf16.msra.mxu2 %v407_v24 }
  0x31   :  { %206 = vmatpush.bf16.msra.mxu1 %v398_v9 }
  0x33   :  { %291 = vmatpush.bf16.msra.mxu2 %v406_v25 }
  0x94   :  { %v123_v14 = vpop.f32.mrf.mxu0 }
  0x95   :  { %v124_v16 = vadd.f32 %v423_v15, %v123_v14 }
  0x97   :  { %v128_v19 = vmax.f32 %v124_v16, 0.0 }
  0x9c   :  { %v125_v17 = vpop.f32.mrf.mxu0 }
  0x9d   :  { %v126_v18 = vadd.f32 %v423_v15, %v125_v17 }
  0x9f   :  { %v129_v20 = vmax.f32 %v126_v18, 0.0 }
  0xa1   :  { %v130_v21 = vpack.c.bf16 %v129_v20, %v128_v19 }
  0xa3   :  { %207 = vmatmul.bf16.vlgmr.msra.gmra.mxu1 %v130_v21 }
 0x120   :  { %v208_v26 = vpop.f32.mrf.mxu1 }
 0x121   :  { %v209_v28 = vadd.f32 %v424_v27, %v208_v26 }
 0x123   :  { %v213_v31 = vmax.f32 %v209_v28, 0.0 }
 0x128   :  { %v210_v29 = vpop.f32.mrf.mxu1 }
 0x129   :  { %v211_v30 = vadd.f32 %v424_v27, %v210_v29 }
 0x12b   :  { %v214_v32 = vmax.f32 %v211_v30, 0.0 }
 0x12d   :  { %v215_v33 = vpack.c.bf16 %v214_v32, %v213_v31 }
 0x12f   :  { %292 = vmatmul.bf16.vlgmr.msra.gmra.mxu2 %v215_v33 }
 0x1b2   :  { %v293_v35 = vpop.f32.mrf.mxu2 }
 0x1b3   :  { %v294_v36 = vadd.f32 %v425_v34, %v293_v35 }
 0x1b5   :  { %v298_v37 = vmax.f32 %v294_v36, 0.0 }
 0x1b7   :  { %300 = vst [vmem:[#allocation10] sm:$0xff] %v298_v37 }
 0x1ba   :  { %v295_v38 = vpop.f32.mrf.mxu2 }
 0x1bb   :  { %v296_v39 = vadd.f32 %v425_v34, %v295_v38 }
 0x1bd   :  { %v299_v40 = vmax.f32 %v296_v39, 0.0 }
 0x1bf   :  { %301 = vst [vmem:[#allocation10 + $0x8] sm:$0xff] %v299_v40 }
 0x1c0   :  { %314 = dma.vmem_to_hbm [thread:$0]  %s307_s25, 256, %s309_s4, [#allocation4], %s561_s28, %s561_s28, %s562_s29  }
 0x1c1   :  { %552 = dma.done.wait [#allocation4], 256  }
 0x1c2   :  { %553 = vsyncadd [#allocation4], 4294967040 }
 0x1c3   :  { %319 = vsyncpa [#allocation3], 1 }
 0x1c4   :  { %320 = vsyncpa [#allocation6], 1 }
 0x1c5   :  { %321 = vsyncpa [#allocation9], 1 }
 0x1c6   :  { %322 = vsyncpa [#allocation4], 1 }

// kernel: tpu_custom_call.1
= control target key start
LH: loop header
LB: loop body
LE: loop exit
PB: predicated region body
PF: predicated region fallthrough
CT: control target
= control target key end

     0   :  { %12 = vsyncpa [#allocation3], 0  ;;  %s627_s0 = inlined_call_operand.hbm [shape: bf16[16,16], index: 0, kind: input, shape index: {}]   ;;  %s628_s1 = inlined_call_operand.hbm [shape: bf16[16,128], index: 1, kind: input, shape index: {}]   ;;  %s629_s2 = inlined_call_operand.vmem [shape: f32[1,128], index: 2, kind: input, shape index: {}]   ;;  %s630_s3 = inlined_call_operand.hbm [shape: bf16[128,128], index: 3, kind: input, shape index: {}]   ;;  %s631_s4 = inlined_call_operand.vmem [shape: f32[1,128], index: 4, kind: input, shape index: {}]   ;;  %s632_s5 = inlined_call_operand.hbm [shape: bf16[128,128], index: 5, kind: input, shape index: {}]   ;;  %s633_s6 = inlined_call_operand.vmem [shape: f32[1,128], index: 6, kind: input, shape index: {}]   ;;  %s634_s7 = inlined_call_operand.hbm [shape: f32[16,128], index: 7, kind: output, shape index: {}]  }
   0x1   :  { %13 = vsyncpa [#allocation6], 0 }
   0x2   :  { %14 = vsyncpa [#allocation9], 0 }
   0x3   :  { %15 = vsyncpa [#allocation4], 0  ;;  %s33_s26 = sshll.u32 %s628_s1, 4  ;;  %s554_s27 = smov [#allocation5]   ;;  %s34_s26 = int_to_ptr.hbm [resolvable:$true] %s33_s26 }
   0x4   :  { %s35_s28 = sshll.u32 %s554_s27, 4  ;;  %s20_s8 = sshll.u32 %s627_s0, 4  ;;  %s36_s28 = int_to_ptr.vmem [resolvable:$true] %s35_s28  ;;  %s21_s8 = int_to_ptr.hbm [resolvable:$true] %s20_s8 }
   0x5   :  { %s555_s9 = smov 64   ;;  %s556_s10 = smov 4  }
   0x6   :  { %41 = dma.hbm_to_vmem [thread:$0]  %s34_s26, 128, %s36_s28, [#allocation6], %s555_s9, %s555_s9, %s556_s10  }
   0x7   :  { %s557_s11 = smov [#allocation2]   ;;  %s48_s15 = sshll.u32 %s630_s3, 4  ;;  %s49_s15 = int_to_ptr.hbm [resolvable:$true] %s48_s15 }
   0x8   :  { %s22_s12 = sshll.u32 %s557_s11, 4  ;;  %s63_s17 = sshll.u32 %s632_s5, 4  ;;  %s23_s12 = int_to_ptr.vmem [resolvable:$true] %s22_s12  ;;  %s64_s17 = int_to_ptr.hbm [resolvable:$true] %s63_s17 }
   0x9   :  { %28 = dma.hbm_to_vmem [thread:$0]  %s21_s8, 128, %s23_s12, [#allocation3], %s555_s9, %s555_s9, %s556_s10  }
   0xa   :  { %s558_s18 = smov [#allocation7]   ;;  %s559_s0 = smov [#allocation8]  }
   0xb   :  { %s50_s19 = sshll.u32 %s558_s18, 4  ;;  %s65_s20 = sshll.u32 %s559_s0, 4  ;;  %s51_s19 = int_to_ptr.vmem [resolvable:$true] %s50_s19  ;;  %s66_s20 = int_to_ptr.vmem [resolvable:$true] %s65_s20 }
   0xc   :  { %56 = dma.hbm_to_vmem [thread:$0]  %s49_s15, 1024, %s51_s19, [#allocation6], %s555_s9, %s555_s9, %s556_s10  }
   0xd   :  { %71 = dma.hbm_to_vmem [thread:$0]  %s64_s17, 1024, %s66_s20, [#allocation9], %s555_s9, %s555_s9, %s556_s10  }
   0xe   :  { %546 = dma.done.wait [#allocation3], 128  }
   0xf   :  { %547 = vsyncadd [#allocation3], 4294967168 }
  0x10   :  { %548 = dma.done.wait [#allocation6], 1152  }
  0x11   :  { %549 = vsyncadd [#allocation6], 4294966144 }
  0x12   :  { %550 = dma.done.wait [#allocation9], 1024  }
  0x13   :  { %551 = vsyncadd [#allocation9], 4294966272  ;;  %v397_v0 = vld [vmem:[#allocation5] sm:$0xff]  ;;  %v396_v2 = vld [vmem:[#allocation2] sm:$0xff]  ;;  %vm110_vm0 = vcmask 130048   ;;  %s560_s24 = smov [#allocation10]  }
  0x14   :  { %v405_v1 = vld [vmem:[#allocation7 + $0x38] sm:$0xff]  ;;  %121 = vmatpush.bf16.msra.mxu0 %v397_v0  ;;  %v404_v3 = vld [vmem:[#allocation7 + $0x30] sm:$0xff]  ;;  %v403_v4 = vld [vmem:[#allocation7 + $0x28] sm:$0xff]  ;;  %s306_s25 = sshll.u32 %s560_s24, 4  ;;  %s561_s28 = smov 128   ;;  %s307_s25 = int_to_ptr.vmem [resolvable:$true] %s306_s25 }
  0x15   :  { %199 = vmatpush.bf16.msra.mxu1 %v405_v1  ;;  %v402_v5 = vld [vmem:[#allocation7 + $0x20] sm:$0xff]  ;;  %v401_v6 = vld [vmem:[#allocation7 + $0x18] sm:$0xff]  ;;  %v400_v7 = vld [vmem:[#allocation7 + $0x10] sm:$0xff]  ;;  %s562_s29 = smov 8  }
  0x16   :  { %v399_v8 = vld [vmem:[#allocation7 + $0x8] sm:$0xff]  ;;  %v398_v9 = vld [vmem:[#allocation7] sm:$0xff]  ;;  %v413_v10 = vld [vmem:[#allocation8 + $0x38] sm:$0xff] }
  0x17   :  { %331 = vmatmul.msk.bf16.vlgmr.msra.gmra.mxu0 %vm110_vm0, %v396_v2  ;;  %284 = vmatpush.bf16.msra.mxu2 %v413_v10  ;;  %v412_v11 = vld [vmem:[#allocation8 + $0x30] sm:$0xff]  ;;  %v411_v12 = vld [vmem:[#allocation8 + $0x28] sm:$0xff]  ;;  %v410_v13 = vld [vmem:[#allocation8 + $0x20] sm:$0xff] }
  0x18   :  { %v423_v15 = vld [vmem:[%s629_s2] ss:$0 sm:$0xff]  ;;  %v409_v22 = vld [vmem:[#allocation8 + $0x18] sm:$0xff]  ;;  %v407_v24 = vld [vmem:[#allocation8 + $0x8] sm:$0xff] }
  0x19   :  { %200 = vmatpush.bf16.msra.mxu1 %v404_v3  ;;  %v408_v23 = vld [vmem:[#allocation8 + $0x10] sm:$0xff]  ;;  %v406_v25 = vld [vmem:[#allocation8] sm:$0xff] }
  0x1a   :  { %v424_v27 = vld [vmem:[%s631_s4] ss:$0 sm:$0xff]  ;;  %s308_s4 = sshll.u32 %s634_s7, 4  ;;  %s309_s4 = int_to_ptr.hbm [resolvable:$true] %s308_s4 }
  0x1b   :  { %285 = vmatpush.bf16.msra.mxu2 %v412_v11  ;;  %v425_v34 = vld [vmem:[%s633_s6] ss:$0 sm:$0xff] }
  0x1d   :  { %201 = vmatpush.bf16.msra.mxu1 %v403_v4 }
  0x1f   :  { %286 = vmatpush.bf16.msra.mxu2 %v411_v12 }
  0x21   :  { %202 = vmatpush.bf16.msra.mxu1 %v402_v5 }
  0x23   :  { %287 = vmatpush.bf16.msra.mxu2 %v410_v13 }
  0x25   :  { %203 = vmatpush.bf16.msra.mxu1 %v401_v6 }
  0x27   :  { %288 = vmatpush.bf16.msra.mxu2 %v409_v22 }
  0x29   :  { %204 = vmatpush.bf16.msra.mxu1 %v400_v7 }
  0x2b   :  { %289 = vmatpush.bf16.msra.mxu2 %v408_v23 }
  0x2d   :  { %205 = vmatpush.bf16.msra.mxu1 %v399_v8 }
  0x2f   :  { %290 = vmatpush.bf16.msra.mxu2 %v407_v24 }
  0x31   :  { %206 = vmatpush.bf16.msra.mxu1 %v398_v9 }
  0x33   :  { %291 = vmatpush.bf16.msra.mxu2 %v406_v25 }
  0x94   :  { %v123_v14 = vpop.f32.mrf.mxu0 }
  0x95   :  { %v124_v16 = vadd.f32 %v423_v15, %v123_v14 }
  0x97   :  { %v128_v19 = vmax.f32 %v124_v16, 0.0 }
  0x9c   :  { %v125_v17 = vpop.f32.mrf.mxu0 }
  0x9d   :  { %v126_v18 = vadd.f32 %v423_v15, %v125_v17 }
  0x9f   :  { %v129_v20 = vmax.f32 %v126_v18, 0.0 }
  0xa1   :  { %v130_v21 = vpack.c.bf16 %v129_v20, %v128_v19 }
  0xa3   :  { %207 = vmatmul.bf16.vlgmr.msra.gmra.mxu1 %v130_v21 }
 0x120   :  { %v208_v26 = vpop.f32.mrf.mxu1 }
 0x121   :  { %v209_v28 = vadd.f32 %v424_v27, %v208_v26 }
 0x123   :  { %v213_v31 = vmax.f32 %v209_v28, 0.0 }
 0x128   :  { %v210_v29 = vpop.f32.mrf.mxu1 }
 0x129   :  { %v211_v30 = vadd.f32 %v424_v27, %v210_v29 }
 0x12b   :  { %v214_v32 = vmax.f32 %v211_v30, 0.0 }
 0x12d   :  { %v215_v33 = vpack.c.bf16 %v214_v32, %v213_v31 }
 0x12f   :  { %292 = vmatmul.bf16.vlgmr.msra.gmra.mxu2 %v215_v33 }
 0x1b2   :  { %v293_v35 = vpop.f32.mrf.mxu2 }
 0x1b3   :  { %v294_v36 = vadd.f32 %v425_v34, %v293_v35 }
 0x1b5   :  { %v298_v37 = vmax.f32 %v294_v36, 0.0 }
 0x1b7   :  { %300 = vst [vmem:[#allocation10] sm:$0xff] %v298_v37 }
 0x1ba   :  { %v295_v38 = vpop.f32.mrf.mxu2 }
 0x1bb   :  { %v296_v39 = vadd.f32 %v425_v34, %v295_v38 }
 0x1bd   :  { %v299_v40 = vmax.f32 %v296_v39, 0.0 }
 0x1bf   :  { %301 = vst [vmem:[#allocation10 + $0x8] sm:$0xff] %v299_v40 }
 0x1c0   :  { %314 = dma.vmem_to_hbm [thread:$0]  %s307_s25, 256, %s309_s4, [#allocation4], %s561_s28, %s561_s28, %s562_s29  }
 0x1c1   :  { %552 = dma.done.wait [#allocation4], 256  }
 0x1c2   :  { %553 = vsyncadd [#allocation4], 4294967040 }
 0x1c3   :  { %319 = vsyncpa [#allocation3], 1 }
 0x1c4   :  { %320 = vsyncpa [#allocation6], 1 }
 0x1c5   :  { %321 = vsyncpa [#allocation9], 1 }
 0x1c6   :  { %322 = vsyncpa [#allocation4], 1 }

</bundles_post_ra>
